<compile_context>
chip_gen: v5e
topology: v5e:2x2
jax: 0.10.0
libtpu: 0.0.40
codegen_flags: <defaults>
</compile_context>

<pallas_src>
import math
from functools import partial

import jax
import jax.numpy as jnp
from jax.experimental import pallas as pl
from jax.experimental.pallas import tpu as pltpu

EPS = 1e-5  # ScaleNorm eps


# --------------------------------------------------------------------------
# tiling / compiler-param helpers
# --------------------------------------------------------------------------
def _row_tile(n, target=256):
    """Largest multiple-of-8 divisor of n that is <= target (or n itself if small)."""
    if n <= target:
        return n
    t = (target // 8) * 8
    while t >= 8:
        if n % t == 0:
            return t
        t -= 8
    return n  # fallback: whole slab


def _head_block(bh, s, dh, budget_bytes=8 << 20):
    """Heads processed per grid step: as many as fit a modest VMEM budget."""
    per_head = (4 * s * dh + 3 * s * s) * 4  # q,k,v,o + scores/probs/weights (f32)
    hb = max(1, min(bh, budget_bytes // max(per_head, 1)))
    while bh % hb != 0:
        hb -= 1
    return hb


def _vmem_params(block_bytes, semantics):
    """Explicit VMEM budget (safe on v7x's 64 MiB) + megacore semantics."""
    limit = int(min(max(3 * block_bytes + (4 << 20), 8 << 20), 48 << 20))
    return pltpu.CompilerParams(dimension_semantics=semantics,
                                vmem_limit_bytes=limit)


# --------------------------------------------------------------------------
# Kernel 1: fused ScaleNorm_1 + QKV projection
#   xn  = x * scale / max(||x||, eps)
#   qkv = xn @ Wqkv + bqkv            (Wqkv = [Wq | Wk | Wv], shape (D, 3D))
# --------------------------------------------------------------------------
def _norm_qkv_kernel(scale_ref, x_ref, w_ref, b_ref, xn_ref, qkv_ref):
    x = x_ref[...]
    norm = jnp.maximum(jnp.sqrt(jnp.sum(x * x, axis=-1, keepdims=True)), EPS)
    xn = x * (scale_ref[0, 0] / norm)
    xn_ref[...] = xn.astype(xn_ref.dtype)
    qkv = jnp.dot(xn, w_ref[...], preferred_element_type=jnp.float32) + b_ref[...]
    qkv_ref[...] = qkv.astype(qkv_ref.dtype)


def norm_qkv(x2d, scale, wqkv, bqkv):
    N, D = x2d.shape
    D3 = wqkv.shape[1]
    bqkv = bqkv.reshape(1, D3)
    tn = _row_tile(N)
    block_bytes = (tn * D + D * D3 + D3 + tn * D + tn * D3) * 4
    return pl.pallas_call(
        _norm_qkv_kernel,
        out_shape=(
            jax.ShapeDtypeStruct((N, D), x2d.dtype),    # xn (residual skip)
            jax.ShapeDtypeStruct((N, D3), x2d.dtype),   # qkv
        ),
        grid=(N // tn,),
        in_specs=[
            pl.BlockSpec(memory_space=pltpu.MemorySpace.SMEM),     # scale (1,1)
            pl.BlockSpec((tn, D), lambda i: (i, 0)),
            pl.BlockSpec((D, D3), lambda i: (0, 0)),               # resident weights
            pl.BlockSpec((1, D3), lambda i: (0, 0)),
        ],
        out_specs=(
            pl.BlockSpec((tn, D), lambda i: (i, 0)),
            pl.BlockSpec((tn, D3), lambda i: (i, 0)),
        ),
        compiler_params=_vmem_params(block_bytes, ("parallel",)),
    )(scale, x2d, wqkv, bqkv)


# --------------------------------------------------------------------------
# Kernel 2: attention core, a block of heads per grid step
#   scores = (q @ k^T) / sqrt(d_head);  p = softmax(scores);  out = p @ v
# --------------------------------------------------------------------------
def _make_attn_kernel(d_head):
    inv_sqrt = 1.0 / math.sqrt(d_head)

    def kernel(q_ref, k_ref, v_ref, o_ref, w_ref):
        q = q_ref[...]                                  # (Hb, S, dh)
        k = k_ref[...]
        v = v_ref[...]
        s = jnp.einsum("hqd,hkd->hqk", q, k,
                       preferred_element_type=jnp.float32) * inv_sqrt
        m = jnp.max(s, axis=-1, keepdims=True)
        p = jnp.exp(s - m)
        denom = jnp.sum(p, axis=-1, keepdims=True)
        p = p * pl.reciprocal(denom, approx=True)       # EUP slot, frees the VPU
        # TODO(synk): attention-weight dropout omitted (eval-mode identity).
        w_ref[...] = p.astype(w_ref.dtype)
        o_ref[...] = jnp.einsum("hqk,hkd->hqd", p.astype(v.dtype), v,
                                preferred_element_type=jnp.float32).astype(o_ref.dtype)

    return kernel


def attention_core(qh, kh, vh, d_head):
    BH, S, dh = qh.shape
    hb = _head_block(BH, S, dh)
    in_spec = pl.BlockSpec((hb, S, dh), lambda i: (i, 0, 0))
    block_bytes = (4 * hb * S * dh + 3 * hb * S * S) * 4
    return pl.pallas_call(
        _make_attn_kernel(d_head),
        out_shape=(
            jax.ShapeDtypeStruct((BH, S, dh), qh.dtype),   # attention output
            jax.ShapeDtypeStruct((BH, S, S), qh.dtype),    # attention weights
        ),
        grid=(BH // hb,),
        in_specs=[in_spec, in_spec, in_spec],
        out_specs=(
            pl.BlockSpec((hb, S, dh), lambda i: (i, 0, 0)),
            pl.BlockSpec((hb, S, S), lambda i: (i, 0, 0)),
        ),
        compiler_params=_vmem_params(block_bytes, ("parallel",)),
    )(qh, kh, vh)


# --------------------------------------------------------------------------
# Kernel 3: fused out-projection + residual + ScaleNorm_2 + FF1/ReLU/FF2 + residual
#   x2  = skip1 + (attn_out @ Wo + bo)
#   xn2 = ScaleNorm(x2)
#   out = xn2 + relu(xn2 @ W1 + b1) @ W2 + b2
# The (tn, FF) hidden activation lives entirely in VMEM.
# --------------------------------------------------------------------------
def _out_ffn_kernel(scale_ref, attn_ref, skip_ref, wo_ref, bo_ref,
                    w1_ref, b1_ref, w2_ref, b2_ref, o_ref):
    x2 = (jnp.dot(attn_ref[...], wo_ref[...], preferred_element_type=jnp.float32)
          + bo_ref[...] + skip_ref[...])
    norm = jnp.maximum(jnp.sqrt(jnp.sum(x2 * x2, axis=-1, keepdims=True)), EPS)
    xn2 = x2 * (scale_ref[0, 0] / norm)
    h = jnp.maximum(
        jnp.dot(xn2.astype(w1_ref.dtype), w1_ref[...],
                preferred_element_type=jnp.float32) + b1_ref[...], 0.0)
    y = (jnp.dot(h.astype(w2_ref.dtype), w2_ref[...],
                 preferred_element_type=jnp.float32) + b2_ref[...] + xn2)
    o_ref[...] = y.astype(o_ref.dtype)


def out_proj_ffn(attn_out, skip1, scale2, wo, bo, w1, b1, w2, b2):
    N, D = attn_out.shape
    FF = w1.shape[1]
    # all biases must be rank-2 so BlockSpec ranks match array ranks
    bo = bo.reshape(1, D)
    b1 = b1.reshape(1, FF)
    b2 = b2.reshape(1, D)
    tn = _row_tile(N)
    block_bytes = (2 * tn * D + D * D + D * FF + FF * D + 2 * (D + FF)
                   + tn * FF + 2 * tn * D) * 4
    return pl.pallas_call(
        _out_ffn_kernel,
        out_shape=jax.ShapeDtypeStruct((N, D), attn_out.dtype),
        grid=(N // tn,),
        in_specs=[
            pl.BlockSpec(memory_space=pltpu.MemorySpace.SMEM),   # scale2 (1,1)
            pl.BlockSpec((tn, D), lambda i: (i, 0)),             # attn_out tile
            pl.BlockSpec((tn, D), lambda i: (i, 0)),             # skip1 tile
            pl.BlockSpec((D, D), lambda i: (0, 0)),              # Wo (resident)
            pl.BlockSpec((1, D), lambda i: (0, 0)),              # bo
            pl.BlockSpec((D, FF), lambda i: (0, 0)),             # W1 (resident)
            pl.BlockSpec((1, FF), lambda i: (0, 0)),             # b1
            pl.BlockSpec((FF, D), lambda i: (0, 0)),             # W2 (resident)
            pl.BlockSpec((1, D), lambda i: (0, 0)),              # b2
        ],
        out_specs=pl.BlockSpec((tn, D), lambda i: (i, 0)),
        compiler_params=_vmem_params(block_bytes, ("parallel",)),
    )(scale2, attn_out, skip1, wo, bo, w1, b1, w2, b2)


# --------------------------------------------------------------------------
# Full encoder layer forward
# --------------------------------------------------------------------------
@partial(jax.jit, static_argnames="num_heads")
def transformer_encoder_layer(x, params, num_heads):
    S, B, D = x.shape
    H = num_heads
    dh = D // H
    N = S * B

    x2d = x.reshape(N, D)

    # fused ScaleNorm_1 + QKV projection (single (D, 3D) matmul)
    wqkv = jnp.concatenate([params["wq"], params["wk"], params["wv"]], axis=1)
    bqkv = jnp.concatenate([params["bq"], params["bk"], params["bv"]])
    xn, qkv = norm_qkv(x2d, params["scale1"], wqkv, bqkv)

    q, k, v = qkv[:, :D], qkv[:, D:2 * D], qkv[:, 2 * D:]

    # split heads: (S*B, D) -> (S, B*H, dh) -> (B*H, S, dh)  (b*H + h ordering)
    to_heads = lambda t: t.reshape(S, B * H, dh).transpose(1, 0, 2)
    attn_out_h, attn_weights = attention_core(to_heads(q), to_heads(k), to_heads(v), dh)

    # merge heads back: (B*H, S, dh) -> (S, B*H, dh) -> (S*B, D)
    attn_out = attn_out_h.transpose(1, 0, 2).reshape(N, D)

    # fused out-projection + residual + ScaleNorm_2 + FF1/ReLU/FF2 + residual
    # TODO(synk): dropout_1 / dropout_3 omitted (eval-mode identity). padd_mask=None path only.
    out = out_proj_ffn(attn_out, xn, params["scale2"],
                       params["wo"], params["bo"],
                       params["w1"], params["b1"],
                       params["w2"], params["b2"])

    return out.reshape(S, B, D), attn_weights


# --------------------------------------------------------------------------
# Pure-JAX reference (high precision) for sanity check
# --------------------------------------------------------------------------
def reference_forward(x, p, num_heads):
    S, B, D = x.shape
    H = num_heads
    dh = D // H
    hp = jax.lax.Precision.HIGHEST

    def sn(t, scale):
        n = jnp.maximum(jnp.sqrt(jnp.sum(t * t, -1, keepdims=True)), EPS)
        return t * (scale / n)

    def lin(t, w, b):
        return jnp.dot(t, w, precision=hp) + b

    x2 = x.reshape(S * B, D)
    xn = sn(x2, p["scale1"][0, 0])
    q = lin(xn, p["wq"], p["bq"])
    k = lin(xn, p["wk"], p["bk"])
    v = lin(xn, p["wv"], p["bv"])
    th = lambda t: t.reshape(S, B * H, dh).transpose(1, 0, 2)
    qh, kh, vh = th(q), th(k), th(v)
    s = jnp.einsum("bij,bkj->bik", qh, kh, precision=hp) / math.sqrt(dh)
    w = jax.nn.softmax(s, axis=-1)
    o = jnp.einsum("bik,bkd->bid", w, vh, precision=hp)
    o = o.transpose(1, 0, 2).reshape(S * B, D)
    x2 = xn + lin(o, p["wo"], p["bo"])
    xn2 = sn(x2, p["scale2"][0, 0])
    h = jnp.maximum(lin(xn2, p["w1"], p["b1"]), 0.0)
    out = xn2 + lin(h, p["w2"], p["b2"])
    return out.reshape(S, B, D), w


# --------------------------------------------------------------------------
if __name__ == "__main__":
    # small shapes consistent with the module
    S, B, D = 8, 2, 32           # seq_len, batch, d_model
    H, FF = 4, 64                # num_heads, ff_dim

    key = jax.random.PRNGKey(0)
    ks = jax.random.split(key, 12)
    init_w = lambda k, shape: (jax.random.normal(k, shape, jnp.float32) * 0.05)

    params = {
        "scale1": jnp.array([[math.sqrt(D)]], jnp.float32),
        "scale2": jnp.array([[math.sqrt(D)]], jnp.float32),
        # weights stored as (in, out) so kernels compute x @ W + b
        "wq": init_w(ks[0], (D, D)),  "bq": init_w(ks[1], (D,)),
        "wk": init_w(ks[2], (D, D)),  "bk": init_w(ks[3], (D,)),
        "wv": init_w(ks[4], (D, D)),  "bv": init_w(ks[5], (D,)),
        "wo": init_w(ks[6], (D, D)),  "bo": init_w(ks[7], (D,)),
        "w1": init_w(ks[8], (D, FF)), "b1": init_w(ks[9], (FF,)),
        "w2": init_w(ks[10], (FF, D)), "b2": init_w(ks[11], (D,)),
    }

    x = jax.random.normal(jax.random.PRNGKey(1), (S, B, D), jnp.float32)

    out, attn_w = transformer_encoder_layer(x, params, num_heads=H)
    out = jax.block_until_ready(out)
    attn_w = jax.block_until_ready(attn_w)

    ref_out, ref_w = reference_forward(x, params, num_heads=H)

    assert out.shape == (S, B, D)
    assert attn_w.shape == (B * H, S, S)
    assert jnp.allclose(out, ref_out, atol=1e-2, rtol=1e-2), \
        f"output mismatch: max err {jnp.max(jnp.abs(out - ref_out))}"
    assert jnp.allclose(attn_w, ref_w, atol=1e-2, rtol=1e-2), \
        f"attn weights mismatch: max err {jnp.max(jnp.abs(attn_w - ref_w))}"

    print("KERNEL_OK")
</pallas_src>

<mosaic_0001>
module attributes {stable_mosaic.version = 11 : i64} {
  func.func @_norm_qkv_kernel(%arg0: i32, %arg1: memref<1x1xf32, #tpu.memory_space<smem>>, %arg2: memref<16x32xf32, #tpu.memory_space<vmem>>, %arg3: memref<32x96xf32, #tpu.memory_space<vmem>>, %arg4: memref<1x96xf32, #tpu.memory_space<vmem>>, %arg5: memref<16x32xf32, #tpu.memory_space<vmem>>, %arg6: memref<16x96xf32, #tpu.memory_space<vmem>>) attributes {dimension_semantics = [#tpu.dimension_semantics<parallel>], iteration_bounds = array<i64: 1>, scalar_prefetch = 0 : i64, scratch_operands = 0 : i64, tpu.core_type = #tpu.core_type<tc>, window_params = [{transform_indices = @transform_0, window_bounds = array<i64: 1, 1>}, {transform_indices = @transform_1, window_bounds = array<i64: 16, 32>}, {pipeline_mode = #tpu.pipeline_mode<synchronous>, transform_indices = @transform_2, window_bounds = array<i64: 32, 96>}, {pipeline_mode = #tpu.pipeline_mode<synchronous>, transform_indices = @transform_3, window_bounds = array<i64: 1, 96>}, {transform_indices = @transform_4, window_bounds = array<i64: 16, 32>}, {transform_indices = @transform_5, window_bounds = array<i64: 16, 96>}]} {
    %c0 = arith.constant 0 : index
    %c0_0 = arith.constant 0 : index
    %0 = vector.load %arg2[%c0, %c0_0] : memref<16x32xf32, #tpu.memory_space<vmem>>, vector<16x32xf32>
    %1 = arith.mulf %0, %0 : vector<16x32xf32>
    %cst = arith.constant dense<0.000000e+00> : vector<16xf32>
    %2 = vector.multi_reduction <add>, %1, %cst [1] : vector<16x32xf32> to vector<16xf32>
    %3 = vector.shape_cast %2 : vector<16xf32> to vector<16x1xf32>
    %4 = math.sqrt %3 : vector<16x1xf32>
    %cst_1 = arith.constant 9.99999974E-6 : f32
    %5 = vector.broadcast %cst_1 : f32 to vector<16x1xf32>
    %6 = arith.maximumf %4, %5 : vector<16x1xf32>
    %c0_2 = arith.constant 0 : index
    %c0_3 = arith.constant 0 : index
    %7 = memref.load %arg1[%c0_2, %c0_3] : memref<1x1xf32, #tpu.memory_space<smem>>
    %8 = vector.broadcast %7 : f32 to vector<16x1xf32>
    %9 = arith.divf %8, %6 : vector<16x1xf32>
    %10 = vector.broadcast %9 : vector<16x1xf32> to vector<16x32xf32>
    %11 = arith.mulf %0, %10 : vector<16x32xf32>
    %c0_4 = arith.constant 0 : index
    %c0_5 = arith.constant 0 : index
    %12 = vector.load %arg5[%c0_4, %c0_5] : memref<16x32xf32, #tpu.memory_space<vmem>>, vector<16x32xf32>
    tpu.vector_store %arg5[%c0_4, %c0_5], %11 {strides = array<i32>} : memref<16x32xf32, #tpu.memory_space<vmem>>, vector<16x32xf32>,
    %c0_6 = arith.constant 0 : index
    %c0_7 = arith.constant 0 : index
    %13 = vector.load %arg3[%c0_6, %c0_7] : memref<32x96xf32, #tpu.memory_space<vmem>>, vector<32x96xf32>
    %cst_8 = arith.constant dense<0.000000e+00> : vector<16x96xf32>
    %14 = tpu.matmul %11, %13, %cst_8 {dimension_numbers = #tpu.dot_dimension_numbers<[1], [0], [0], [1], [0, 0, 1, 1], [], []>} : vector<16x32xf32>, vector<32x96xf32>, vector<16x96xf32> -> vector<16x96xf32>
    %c0_9 = arith.constant 0 : index
    %c0_10 = arith.constant 0 : index
    %15 = vector.load %arg4[%c0_9, %c0_10] : memref<1x96xf32, #tpu.memory_space<vmem>>, vector<1x96xf32>
    %16 = vector.broadcast %15 : vector<1x96xf32> to vector<16x96xf32>
    %17 = arith.addf %14, %16 : vector<16x96xf32>
    %c0_11 = arith.constant 0 : index
    %c0_12 = arith.constant 0 : index
    %18 = vector.load %arg6[%c0_11, %c0_12] : memref<16x96xf32, #tpu.memory_space<vmem>>, vector<16x96xf32>
    tpu.vector_store %arg6[%c0_11, %c0_12], %17 {strides = array<i32>} : memref<16x96xf32, #tpu.memory_space<vmem>>, vector<16x96xf32>,
    return
  }
  func.func @transform_0(%arg0: i32) -> (i32, i32) {
    %c0_i32 = arith.constant 0 : i32
    %c0_i32_0 = arith.constant 0 : i32
    %c0_i32_1 = arith.constant 0 : i32
    return %c0_i32, %c0_i32_0 : i32, i32
  }
  func.func @transform_1(%arg0: i32) -> (i32, i32) {
    %c0_i32 = arith.constant 0 : i32
    %c0_i32_0 = arith.constant 0 : i32
    return %arg0, %c0_i32 : i32, i32
  }
  func.func @transform_2(%arg0: i32) -> (i32, i32) {
    %c0_i32 = arith.constant 0 : i32
    %c0_i32_0 = arith.constant 0 : i32
    %c0_i32_1 = arith.constant 0 : i32
    return %c0_i32, %c0_i32_0 : i32, i32
  }
  func.func @transform_3(%arg0: i32) -> (i32, i32) {
    %c0_i32 = arith.constant 0 : i32
    %c0_i32_0 = arith.constant 0 : i32
    %c0_i32_1 = arith.constant 0 : i32
    return %c0_i32, %c0_i32_0 : i32, i32
  }
  func.func @transform_4(%arg0: i32) -> (i32, i32) {
    %c0_i32 = arith.constant 0 : i32
    %c0_i32_0 = arith.constant 0 : i32
    return %arg0, %c0_i32 : i32, i32
  }
  func.func @transform_5(%arg0: i32) -> (i32, i32) {
    %c0_i32 = arith.constant 0 : i32
    %c0_i32_0 = arith.constant 0 : i32
    return %arg0, %c0_i32 : i32, i32
  }
}

module attributes {stable_mosaic.version = 11 : i64} {
  func.func @kernel(%arg0: i32, %arg1: memref<8x8x8xf32, #tpu.memory_space<vmem>>, %arg2: memref<8x8x8xf32, #tpu.memory_space<vmem>>, %arg3: memref<8x8x8xf32, #tpu.memory_space<vmem>>, %arg4: memref<8x8x8xf32, #tpu.memory_space<vmem>>, %arg5: memref<8x8x8xf32, #tpu.memory_space<vmem>>) attributes {dimension_semantics = [#tpu.dimension_semantics<parallel>], iteration_bounds = array<i64: 1>, scalar_prefetch = 0 : i64, scratch_operands = 0 : i64, tpu.core_type = #tpu.core_type<tc>, window_params = [{transform_indices = @transform_0, window_bounds = array<i64: 8, 8, 8>}, {transform_indices = @transform_1, window_bounds = array<i64: 8, 8, 8>}, {transform_indices = @transform_2, window_bounds = array<i64: 8, 8, 8>}, {transform_indices = @transform_3, window_bounds = array<i64: 8, 8, 8>}, {transform_indices = @transform_4, window_bounds = array<i64: 8, 8, 8>}]} {
    %c0 = arith.constant 0 : index
    %c0_0 = arith.constant 0 : index
    %c0_1 = arith.constant 0 : index
    %0 = vector.load %arg1[%c0, %c0_0, %c0_1] : memref<8x8x8xf32, #tpu.memory_space<vmem>>, vector<8x8x8xf32>
    %c0_2 = arith.constant 0 : index
    %c0_3 = arith.constant 0 : index
    %c0_4 = arith.constant 0 : index
    %1 = vector.load %arg2[%c0_2, %c0_3, %c0_4] : memref<8x8x8xf32, #tpu.memory_space<vmem>>, vector<8x8x8xf32>
    %c0_5 = arith.constant 0 : index
    %c0_6 = arith.constant 0 : index
    %c0_7 = arith.constant 0 : index
    %2 = vector.load %arg3[%c0_5, %c0_6, %c0_7] : memref<8x8x8xf32, #tpu.memory_space<vmem>>, vector<8x8x8xf32>
    "tpu.trace_start"() <{level = 10 : i32, message = "hqd,hkd->hqk"}> : () -> ()
    %cst = arith.constant dense<0.000000e+00> : vector<8x8x8xf32>
    %3 = tpu.matmul %0, %1, %cst {dimension_numbers = #tpu.dot_dimension_numbers<[2], [2], [1], [1], [0, 0, 0, 1, 1, 1], [0], [0]>} : vector<8x8x8xf32>, vector<8x8x8xf32>, vector<8x8x8xf32> -> vector<8x8x8xf32>
    "tpu.trace_stop"() : () -> ()
    %cst_8 = arith.constant 0.353553385 : f32
    %4 = vector.broadcast %cst_8 : f32 to vector<8x8x8xf32>
    %5 = arith.mulf %3, %4 : vector<8x8x8xf32>
    %cst_9 = arith.constant dense<0xFF800000> : vector<8x8xf32>
    %6 = vector.multi_reduction <maximumf>, %5, %cst_9 [2] : vector<8x8x8xf32> to vector<8x8xf32>
    %7 = vector.shape_cast %6 : vector<8x8xf32> to vector<8x8x1xf32>
    %8 = vector.broadcast %7 : vector<8x8x1xf32> to vector<8x8x8xf32>
    %9 = arith.subf %5, %8 : vector<8x8x8xf32>
    %10 = math.exp %9 : vector<8x8x8xf32>
    %cst_10 = arith.constant dense<0.000000e+00> : vector<8x8xf32>
    %11 = vector.multi_reduction <add>, %10, %cst_10 [2] : vector<8x8x8xf32> to vector<8x8xf32>
    %12 = vector.shape_cast %11 : vector<8x8xf32> to vector<8x8x1xf32>
    %13 = tpu.reciprocal %12 {approx = true} : vector<8x8x1xf32> -> vector<8x8x1xf32>
    %14 = vector.broadcast %13 : vector<8x8x1xf32> to vector<8x8x8xf32>
    %15 = arith.mulf %10, %14 : vector<8x8x8xf32>
    %c0_11 = arith.constant 0 : index
    %c0_12 = arith.constant 0 : index
    %c0_13 = arith.constant 0 : index
    %16 = vector.load %arg5[%c0_11, %c0_12, %c0_13] : memref<8x8x8xf32, #tpu.memory_space<vmem>>, vector<8x8x8xf32>
    tpu.vector_store %arg5[%c0_11, %c0_12, %c0_13], %15 {strides = array<i32>} : memref<8x8x8xf32, #tpu.memory_space<vmem>>, vector<8x8x8xf32>,
    "tpu.trace_start"() <{level = 10 : i32, message = "hqk,hkd->hqd"}> : () -> ()
    %cst_14 = arith.constant dense<0.000000e+00> : vector<8x8x8xf32>
    %17 = tpu.matmul %15, %2, %cst_14 {dimension_numbers = #tpu.dot_dimension_numbers<[2], [1], [1], [2], [0, 0, 0, 1, 1, 2], [0], [0]>} : vector<8x8x8xf32>, vector<8x8x8xf32>, vector<8x8x8xf32> -> vector<8x8x8xf32>
    "tpu.trace_stop"() : () -> ()
    %c0_15 = arith.constant 0 : index
    %c0_16 = arith.constant 0 : index
    %c0_17 = arith.constant 0 : index
    %18 = vector.load %arg4[%c0_15, %c0_16, %c0_17] : memref<8x8x8xf32, #tpu.memory_space<vmem>>, vector<8x8x8xf32>
    tpu.vector_store %arg4[%c0_15, %c0_16, %c0_17], %17 {strides = array<i32>} : memref<8x8x8xf32, #tpu.memory_space<vmem>>, vector<8x8x8xf32>,
    return
  }
  func.func @transform_0(%arg0: i32) -> (i32, i32, i32) {
    %c0_i32 = arith.constant 0 : i32
    %c0_i32_0 = arith.constant 0 : i32
    %c0_i32_1 = arith.constant 0 : i32
    return %arg0, %c0_i32, %c0_i32_0 : i32, i32, i32
  }
  func.func @transform_1(%arg0: i32) -> (i32, i32, i32) {
    %c0_i32 = arith.constant 0 : i32
    %c0_i32_0 = arith.constant 0 : i32
    %c0_i32_1 = arith.constant 0 : i32
    return %arg0, %c0_i32, %c0_i32_0 : i32, i32, i32
  }
  func.func @transform_2(%arg0: i32) -> (i32, i32, i32) {
    %c0_i32 = arith.constant 0 : i32
    %c0_i32_0 = arith.constant 0 : i32
    %c0_i32_1 = arith.constant 0 : i32
    return %arg0, %c0_i32, %c0_i32_0 : i32, i32, i32
  }
  func.func @transform_3(%arg0: i32) -> (i32, i32, i32) {
    %c0_i32 = arith.constant 0 : i32
    %c0_i32_0 = arith.constant 0 : i32
    %c0_i32_1 = arith.constant 0 : i32
    return %arg0, %c0_i32, %c0_i32_0 : i32, i32, i32
  }
  func.func @transform_4(%arg0: i32) -> (i32, i32, i32) {
    %c0_i32 = arith.constant 0 : i32
    %c0_i32_0 = arith.constant 0 : i32
    %c0_i32_1 = arith.constant 0 : i32
    return %arg0, %c0_i32, %c0_i32_0 : i32, i32, i32
  }
}

module attributes {stable_mosaic.version = 11 : i64} {
  func.func @_out_ffn_kernel(%arg0: i32, %arg1: memref<1x1xf32, #tpu.memory_space<smem>>, %arg2: memref<16x32xf32, #tpu.memory_space<vmem>>, %arg3: memref<16x32xf32, #tpu.memory_space<vmem>>, %arg4: memref<32x32xf32, #tpu.memory_space<vmem>>, %arg5: memref<1x32xf32, #tpu.memory_space<vmem>>, %arg6: memref<32x64xf32, #tpu.memory_space<vmem>>, %arg7: memref<1x64xf32, #tpu.memory_space<vmem>>, %arg8: memref<64x32xf32, #tpu.memory_space<vmem>>, %arg9: memref<1x32xf32, #tpu.memory_space<vmem>>, %arg10: memref<16x32xf32, #tpu.memory_space<vmem>>) attributes {dimension_semantics = [#tpu.dimension_semantics<parallel>], iteration_bounds = array<i64: 1>, scalar_prefetch = 0 : i64, scratch_operands = 0 : i64, tpu.core_type = #tpu.core_type<tc>, window_params = [{transform_indices = @transform_0, window_bounds = array<i64: 1, 1>}, {transform_indices = @transform_1, window_bounds = array<i64: 16, 32>}, {transform_indices = @transform_2, window_bounds = array<i64: 16, 32>}, {pipeline_mode = #tpu.pipeline_mode<synchronous>, transform_indices = @transform_3, window_bounds = array<i64: 32, 32>}, {pipeline_mode = #tpu.pipeline_mode<synchronous>, transform_indices = @transform_4, window_bounds = array<i64: 1, 32>}, {pipeline_mode = #tpu.pipeline_mode<synchronous>, transform_indices = @transform_5, window_bounds = array<i64: 32, 64>}, {pipeline_mode = #tpu.pipeline_mode<synchronous>, transform_indices = @transform_6, window_bounds = array<i64: 1, 64>}, {pipeline_mode = #tpu.pipeline_mode<synchronous>, transform_indices = @transform_7, window_bounds = array<i64: 64, 32>}, {pipeline_mode = #tpu.pipeline_mode<synchronous>, transform_indices = @transform_8, window_bounds = array<i64: 1, 32>}, {transform_indices = @transform_9, window_bounds = array<i64: 16, 32>}]} {
    %c0 = arith.constant 0 : index
    %c0_0 = arith.constant 0 : index
    %0 = vector.load %arg2[%c0, %c0_0] : memref<16x32xf32, #tpu.memory_space<vmem>>, vector<16x32xf32>
    %c0_1 = arith.constant 0 : index
    %c0_2 = arith.constant 0 : index
    %1 = vector.load %arg4[%c0_1, %c0_2] : memref<32x32xf32, #tpu.memory_space<vmem>>, vector<32x32xf32>
    %cst = arith.constant dense<0.000000e+00> : vector<16x32xf32>
    %2 = tpu.matmul %0, %1, %cst {dimension_numbers = #tpu.dot_dimension_numbers<[1], [0], [0], [1], [0, 0, 1, 1], [], []>} : vector<16x32xf32>, vector<32x32xf32>, vector<16x32xf32> -> vector<16x32xf32>
    %c0_3 = arith.constant 0 : index
    %c0_4 = arith.constant 0 : index
    %3 = vector.load %arg5[%c0_3, %c0_4] : memref<1x32xf32, #tpu.memory_space<vmem>>, vector<1x32xf32>
    %4 = vector.broadcast %3 : vector<1x32xf32> to vector<16x32xf32>
    %5 = arith.addf %2, %4 : vector<16x32xf32>
    %c0_5 = arith.constant 0 : index
    %c0_6 = arith.constant 0 : index
    %6 = vector.load %arg3[%c0_5, %c0_6] : memref<16x32xf32, #tpu.memory_space<vmem>>, vector<16x32xf32>
    %7 = arith.addf %5, %6 : vector<16x32xf32>
    %8 = arith.mulf %7, %7 : vector<16x32xf32>
    %cst_7 = arith.constant dense<0.000000e+00> : vector<16xf32>
    %9 = vector.multi_reduction <add>, %8, %cst_7 [1] : vector<16x32xf32> to vector<16xf32>
    %10 = vector.shape_cast %9 : vector<16xf32> to vector<16x1xf32>
    %11 = math.sqrt %10 : vector<16x1xf32>
    %cst_8 = arith.constant 9.99999974E-6 : f32
    %12 = vector.broadcast %cst_8 : f32 to vector<16x1xf32>
    %13 = arith.maximumf %11, %12 : vector<16x1xf32>
    %c0_9 = arith.constant 0 : index
    %c0_10 = arith.constant 0 : index
    %14 = memref.load %arg1[%c0_9, %c0_10] : memref<1x1xf32, #tpu.memory_space<smem>>
    %15 = vector.broadcast %14 : f32 to vector<16x1xf32>
    %16 = arith.divf %15, %13 : vector<16x1xf32>
    %17 = vector.broadcast %16 : vector<16x1xf32> to vector<16x32xf32>
    %18 = arith.mulf %7, %17 : vector<16x32xf32>
    %c0_11 = arith.constant 0 : index
    %c0_12 = arith.constant 0 : index
    %19 = vector.load %arg6[%c0_11, %c0_12] : memref<32x64xf32, #tpu.memory_space<vmem>>, vector<32x64xf32>
    %cst_13 = arith.constant dense<0.000000e+00> : vector<16x64xf32>
    %20 = tpu.matmul %18, %19, %cst_13 {dimension_numbers = #tpu.dot_dimension_numbers<[1], [0], [0], [1], [0, 0, 1, 1], [], []>} : vector<16x32xf32>, vector<32x64xf32>, vector<16x64xf32> -> vector<16x64xf32>
    %c0_14 = arith.constant 0 : index
    %c0_15 = arith.constant 0 : index
    %21 = vector.load %arg7[%c0_14, %c0_15] : memref<1x64xf32, #tpu.memory_space<vmem>>, vector<1x64xf32>
    %22 = vector.broadcast %21 : vector<1x64xf32> to vector<16x64xf32>
    %23 = arith.addf %20, %22 : vector<16x64xf32>
    %cst_16 = arith.constant 0.000000e+00 : f32
    %24 = vector.broadcast %cst_16 : f32 to vector<16x64xf32>
    %25 = arith.maximumf %23, %24 : vector<16x64xf32>
    %c0_17 = arith.constant 0 : index
    %c0_18 = arith.constant 0 : index
    %26 = vector.load %arg8[%c0_17, %c0_18] : memref<64x32xf32, #tpu.memory_space<vmem>>, vector<64x32xf32>
    %cst_19 = arith.constant dense<0.000000e+00> : vector<16x32xf32>
    %27 = tpu.matmul %25, %26, %cst_19 {dimension_numbers = #tpu.dot_dimension_numbers<[1], [0], [0], [1], [0, 0, 1, 1], [], []>} : vector<16x64xf32>, vector<64x32xf32>, vector<16x32xf32> -> vector<16x32xf32>
    %c0_20 = arith.constant 0 : index
    %c0_21 = arith.constant 0 : index
    %28 = vector.load %arg9[%c0_20, %c0_21] : memref<1x32xf32, #tpu.memory_space<vmem>>, vector<1x32xf32>
    %29 = vector.broadcast %28 : vector<1x32xf32> to vector<16x32xf32>
    %30 = arith.addf %27, %29 : vector<16x32xf32>
    %31 = arith.addf %30, %18 : vector<16x32xf32>
    %c0_22 = arith.constant 0 : index
    %c0_23 = arith.constant 0 : index
    %32 = vector.load %arg10[%c0_22, %c0_23] : memref<16x32xf32, #tpu.memory_space<vmem>>, vector<16x32xf32>
    tpu.vector_store %arg10[%c0_22, %c0_23], %31 {strides = array<i32>} : memref<16x32xf32, #tpu.memory_space<vmem>>, vector<16x32xf32>,
    return
  }
  func.func @transform_0(%arg0: i32) -> (i32, i32) {
    %c0_i32 = arith.constant 0 : i32
    %c0_i32_0 = arith.constant 0 : i32
    %c0_i32_1 = arith.constant 0 : i32
    return %c0_i32, %c0_i32_0 : i32, i32
  }
  func.func @transform_1(%arg0: i32) -> (i32, i32) {
    %c0_i32 = arith.constant 0 : i32
    %c0_i32_0 = arith.constant 0 : i32
    return %arg0, %c0_i32 : i32, i32
  }
  func.func @transform_2(%arg0: i32) -> (i32, i32) {
    %c0_i32 = arith.constant 0 : i32
    %c0_i32_0 = arith.constant 0 : i32
    return %arg0, %c0_i32 : i32, i32
  }
  func.func @transform_3(%arg0: i32) -> (i32, i32) {
    %c0_i32 = arith.constant 0 : i32
    %c0_i32_0 = arith.constant 0 : i32
    %c0_i32_1 = arith.constant 0 : i32
    return %c0_i32, %c0_i32_0 : i32, i32
  }
  func.func @transform_4(%arg0: i32) -> (i32, i32) {
    %c0_i32 = arith.constant 0 : i32
    %c0_i32_0 = arith.constant 0 : i32
    %c0_i32_1 = arith.constant 0 : i32
    return %c0_i32, %c0_i32_0 : i32, i32
  }
  func.func @transform_5(%arg0: i32) -> (i32, i32) {
    %c0_i32 = arith.constant 0 : i32
    %c0_i32_0 = arith.constant 0 : i32
    %c0_i32_1 = arith.constant 0 : i32
    return %c0_i32, %c0_i32_0 : i32, i32
  }
  func.func @transform_6(%arg0: i32) -> (i32, i32) {
    %c0_i32 = arith.constant 0 : i32
    %c0_i32_0 = arith.constant 0 : i32
    %c0_i32_1 = arith.constant 0 : i32
    return %c0_i32, %c0_i32_0 : i32, i32
  }
  func.func @transform_7(%arg0: i32) -> (i32, i32) {
    %c0_i32 = arith.constant 0 : i32
    %c0_i32_0 = arith.constant 0 : i32
    %c0_i32_1 = arith.constant 0 : i32
    return %c0_i32, %c0_i32_0 : i32, i32
  }
  func.func @transform_8(%arg0: i32) -> (i32, i32) {
    %c0_i32 = arith.constant 0 : i32
    %c0_i32_0 = arith.constant 0 : i32
    %c0_i32_1 = arith.constant 0 : i32
    return %c0_i32, %c0_i32_0 : i32, i32
  }
  func.func @transform_9(%arg0: i32) -> (i32, i32) {
    %c0_i32 = arith.constant 0 : i32
    %c0_i32_0 = arith.constant 0 : i32
    return %arg0, %c0_i32 : i32, i32
  }
}

</mosaic_0001>

<bundles_post_ra>
// kernel: transformer_encoder_layer.3
= control target key start
LH: loop header
LB: loop body
LE: loop exit
PB: predicated region body
PF: predicated region fallthrough
CT: control target
= control target key end

     0   :  { %vm24_vm0 = vcmask 261120   ;;  %vm130_vm13 = vcmask 785408   ;;  %s238_s1 = inlined_call_operand.vmem [shape: f32[16,32], index: 1, kind: input, shape index: {}]   ;;  %s239_s3 = inlined_call_operand.vmem [shape: f32[1,96], index: 3, kind: input, shape index: {}]   ;;  %s240_s2 = inlined_call_operand.vmem [shape: f32[32,96], index: 2, kind: input, shape index: {}]   ;;  %s241_s0 = inlined_call_operand.<no memory space> [shape: f32[1,1], index: 0, kind: input, shape index: {}]   ;;  %s242_s4 = inlined_call_operand.vmem [shape: f32[16,32], index: 4, kind: output, shape index: {0}]   ;;  %s243_s5 = inlined_call_operand.vmem [shape: f32[16,96], index: 5, kind: output, shape index: {1}]  }
   0x1   :  { %v189_v0 = vld [vmem:[%s238_s1] sm:$0xff]  ;;  %v196_v2 = vld [vmem:[%s238_s1 + $0x8] sm:$0xff]  ;;  %v96_v7 = vld [vmem:[%s240_s2 + $0x18] sm:$0xff]  ;;  %v58_v42 = vstv %s241_s0 }
   0x2   :  { %v22_v1 = vmul.f32 %v189_v0, %v189_v0  ;;  %v23_v4 = vmul.f32 %v196_v2, %v196_v2  ;;  %v95_v8 = vld [vmem:[%s240_s2 + $0x10] sm:$0xff]  ;;  %119 = vmatpush.msra.mxu0 %v96_v7  ;;  %143 = vmatpush.msra.mxu1 %v96_v7  ;;  %v94_v9 = vld [vmem:[%s240_s2 + $0x8] sm:$0xff]  ;;  %v93_v10 = vld [vmem:[%s240_s2] sm:$0xff] }
   0x3   :  { %v147_v59 = vld [vmem:[%s239_s3] ss:$0 sm:$0xff] }
   0x4   :  { %v25_v3 = vsel %vm24_vm0, %v22_v1, 0.0  ;;  %v28_v5 = vsel %vm24_vm0, %v23_v4, 0.0  ;;  %120 = vmatpush.msra.mxu0 %v95_v8  ;;  %144 = vmatpush.msra.mxu1 %v95_v8 }
   0x5   :  { %26 = vadd.xlane.f32.xlu0 %v25_v3 }
   0x6   :  { %121 = vmatpush.msra.mxu0 %v94_v9  ;;  %145 = vmatpush.msra.mxu1 %v94_v9 }
   0x8   :  { %122 = vmatpush.msra.mxu0 %v93_v10  ;;  %146 = vmatpush.msra.mxu1 %v93_v10 }
   0xd   :  { %29 = vadd.xlane.f32.xlu0 %v28_v5 }
  0x78   :  { %v27_v6 = vpop.xlane.xlu0 %26 }
  0x79   :  { %148 = vrsqrt.f32 %v27_v6  ;;  %vm38_vm1 = vcmp.eq.f32.partialorder %v27_v6, inf  ;;  %v41_v22 = vand.u32 2147483648, %v27_v6  ;;  %vm40_vm2 = vcmp.eq.f32.partialorder %v27_v6, 0.0 }
  0x7f   :  { %v149_v11 = vpop.eup %148 }
  0x80   :  { %v32_v12 = vmul.f32 %v149_v11, %v27_v6  ;;  %v30_v13 = vpop.xlane.xlu0 %29 }
  0x81   :  { %150 = vrsqrt.f32 %v30_v13  ;;  %vm50_vm3 = vcmp.eq.f32.partialorder %v30_v13, inf  ;;  %v53_v30 = vand.u32 2147483648, %v30_v13  ;;  %vm52_vm4 = vcmp.eq.f32.partialorder %v30_v13, 0.0 }
  0x82   :  { %v33_v14 = vmul.f32 %v149_v11, %v32_v12 }
  0x84   :  { %v34_v15 = vmul.f32 0.5, %v33_v14 }
  0x86   :  { %v35_v16 = vsub.f32 1.5, %v34_v15 }
  0x87   :  { %v151_v17 = vpop.eup %150 }
  0x88   :  { %v36_v18 = vmul.f32 %v149_v11, %v35_v16  ;;  %v44_v19 = vmul.f32 %v151_v17, %v30_v13 }
  0x8a   :  { %v37_v20 = vmul.f32 %v36_v18, %v27_v6  ;;  %v45_v21 = vmul.f32 %v151_v17, %v44_v19 }
  0x8c   :  { %v39_v23 = vsel %vm38_vm1, %v27_v6, %v37_v20  ;;  %v46_v24 = vmul.f32 0.5, %v45_v21 }
  0x8d   :  { %v42_v25 = vsel %vm40_vm2, %v41_v22, %v39_v23 }
  0x8e   :  { %v55_v26 = vmax.f32 %v42_v25, 1e-05  ;;  %v47_v27 = vsub.f32 1.5, %v46_v24 }
  0x90   :  { %152 = vrcp.f32 %v55_v26  ;;  %v48_v28 = vmul.f32 %v151_v17, %v47_v27  ;;  %v70_v37 = vand.u32 2147483648, %v55_v26  ;;  %v68_v39 = vand.u32 2147483647, %v55_v26 }
  0x91   :  { %vm64_vm6 = vweird.f32 %v55_v26 }
  0x92   :  { %v49_v29 = vmul.f32 %v48_v28, %v30_v13  ;;  %v71_v43 = vor.u32 1.1754944e-38, %v70_v37  ;;  %vm69_vm8 = vcmp.eq.f32.partialorder %v68_v39, 8.507059e+37 }
  0x94   :  { %v51_v31 = vsel %vm50_vm3, %v30_v13, %v49_v29 }
  0x95   :  { %v54_v32 = vsel %vm52_vm4, %v53_v30, %v51_v31 }
  0x96   :  { %v153_v33 = vpop.eup %152  ;;  %v56_v34 = vmax.f32 %v54_v32, 1e-05 }
  0x97   :  { %v60_v35 = vmul.f32 %v153_v33, %v55_v26  ;;  %vm65_vm5 = vweird.f32 %v153_v33 }
  0x98   :  { %154 = vrcp.f32 %v56_v34  ;;  %vm66_vm7 = vmor %vm64_vm6, %vm65_vm5  ;;  %v85_v49 = vand.u32 2147483648, %v56_v34  ;;  %v83_v52 = vand.u32 2147483647, %v56_v34  ;;  %vm79_vm10 = vweird.f32 %v56_v34 }
  0x99   :  { %v61_v36 = vsub.f32 1.0, %v60_v35 }
  0x9a   :  { %v86_v54 = vor.u32 1.1754944e-38, %v85_v49  ;;  %vm84_vm12 = vcmp.eq.f32.partialorder %v83_v52, 8.507059e+37 }
  0x9b   :  { %v62_v38 = vmul.f32 %v153_v33, %v61_v36 }
  0x9d   :  { %v63_v40 = vadd.f32 %v153_v33, %v62_v38 }
  0x9e   :  { %v155_v41 = vpop.eup %154 }
  0x9f   :  { %v67_v44 = vsel %vm66_vm7, %v153_v33, %v63_v40  ;;  %v75_v45 = vmul.f32 %v155_v41, %v56_v34  ;;  %vm80_vm9 = vweird.f32 %v155_v41 }
  0xa0   :  { %v72_v46 = vsel %vm69_vm8, %v71_v43, %v67_v44  ;;  %vm81_vm11 = vmor %vm79_vm10, %vm80_vm9 }
  0xa1   :  { %v73_v47 = vmul.f32 %v72_v46, %v58_v42  ;;  %v76_v48 = vsub.f32 1.0, %v75_v45 }
  0xa3   :  { %v89_v50 = vmul.f32 %v73_v47, %v189_v0  ;;  %v77_v51 = vmul.f32 %v155_v41, %v76_v48 }
  0xa5   :  { %91 = vst.msk [vmem:[%s242_s4] sm:$0xff] %vm24_vm0, %v89_v50  ;;  %141 = vmatmul.msk.f32.vlgmr.msra.gmra.mxu0 %vm24_vm0, %v89_v50  ;;  %v78_v53 = vadd.f32 %v155_v41, %v77_v51 }
  0xa7   :  { %v82_v55 = vsel %vm81_vm11, %v155_v41, %v78_v53 }
  0xa8   :  { %v87_v56 = vsel %vm84_vm12, %v86_v54, %v82_v55 }
  0xa9   :  { %v88_v57 = vmul.f32 %v87_v56, %v58_v42 }
  0xab   :  { %v90_v58 = vmul.f32 %v88_v57, %v196_v2 }
  0xad   :  { %92 = vst.msk [vmem:[%s242_s4 + $0x8] sm:$0xff] %vm24_vm0, %v90_v58  ;;  %142 = vmatmul.msk.f32.vlgmr.msra.gmra.mxu1 %vm24_vm0, %v90_v58 }
 0x122   :  { %v124_v60 = vpop.f32.mrf.mxu0 }
 0x123   :  { %v125_v61 = vadd.f32 %v147_v59, %v124_v60 }
 0x125   :  { %131 = vst.msk [vmem:[%s243_s5] sm:$0xff] %vm130_vm13, %v125_v61 }
 0x12a   :  { %v127_v62 = vpop.f32.mrf.mxu1 }
 0x12b   :  { %v128_v63 = vadd.f32 %v147_v59, %v127_v62 }
 0x12d   :  { %132 = vst.msk [vmem:[%s243_s5 + $0x8] sm:$0xff] %vm130_vm13, %v128_v63 }

// kernel: transformer_encoder_layer.5
= control target key start
LH: loop header
LB: loop body
LE: loop exit
PB: predicated region body
PF: predicated region fallthrough
CT: control target
= control target key end

     0   :  { %s449_s0 = inlined_call_operand.<no memory space> [shape: f32[1,1], index: 0, kind: input, shape index: {}]   ;;  %s450_s1 = inlined_call_operand.vmem [shape: f32[16,32], index: 1, kind: input, shape index: {}]   ;;  %s451_s2 = inlined_call_operand.vmem [shape: f32[16,32], index: 2, kind: input, shape index: {}]   ;;  %s452_s3 = inlined_call_operand.vmem [shape: f32[32,32], index: 3, kind: input, shape index: {}]   ;;  %s453_s4 = inlined_call_operand.vmem [shape: f32[1,32], index: 4, kind: input, shape index: {}]   ;;  %s454_s5 = inlined_call_operand.vmem [shape: f32[32,64], index: 5, kind: input, shape index: {}]   ;;  %s455_s6 = inlined_call_operand.vmem [shape: f32[1,64], index: 6, kind: input, shape index: {}]   ;;  %s456_s7 = inlined_call_operand.vmem [shape: f32[64,32], index: 7, kind: input, shape index: {}]   ;;  %s457_s8 = inlined_call_operand.vmem [shape: f32[1,32], index: 8, kind: input, shape index: {}]   ;;  %s458_s9 = inlined_call_operand.hbm [shape: f32[16,32], index: 9, kind: output, shape index: {}]  }
   0x1   :  { %v39_v0 = vld [vmem:[%s452_s3 + $0x18] sm:$0xff]  ;;  %v38_v1 = vld [vmem:[%s452_s3 + $0x10] sm:$0xff]  ;;  %v37_v2 = vld [vmem:[%s452_s3 + $0x8] sm:$0xff] }
   0x2   :  { %63 = vmatpush.msra.mxu0 %v39_v0 }
   0x4   :  { %64 = vmatpush.msra.mxu0 %v38_v1 }
   0x5   :  { %15 = vsyncpa [#allocation4], 0  ;;  %v36_v3 = vld [vmem:[%s452_s3] sm:$0xff]  ;;  %vm44_vm0 = vcmask 261120   ;;  %v35_v5 = vld [vmem:[%s450_s1 + $0x8] sm:$0xff]  ;;  %v113_v60 = vstv %s449_s0  ;;  %vm197_vm13 = vcmask 523264  }
   0x6   :  { %65 = vmatpush.msra.mxu0 %v37_v2  ;;  %v34_v4 = vld [vmem:[%s450_s1] sm:$0xff]  ;;  %v75_v14 = vld [vmem:[%s451_s2 + $0x8] sm:$0xff]  ;;  %v149_v20 = vld [vmem:[%s454_s5 + $0x18] sm:$0xff]  ;;  %s237_s28 = sshll.u32 %s458_s9, 4  ;;  %s304_s29 = smov 128   ;;  %s238_s28 = int_to_ptr.hbm [resolvable:$true] %s237_s28 }
   0x7   :  { %v266_v6 = vld [vmem:[%s453_s4] ss:$0 sm:$0xff]  ;;  %v148_v21 = vld [vmem:[%s454_s5 + $0x10] sm:$0xff]  ;;  %172 = vmatpush.msra.mxu1 %v149_v20  ;;  %v147_v22 = vld [vmem:[%s454_s5 + $0x8] sm:$0xff] }
   0x8   :  { %66 = vmatpush.msra.mxu0 %v36_v3  ;;  %v74_v8 = vld [vmem:[%s451_s2] sm:$0xff]  ;;  %v192_v39 = vld [vmem:[%s456_s7 + $0x38] sm:$0xff]  ;;  %v191_v40 = vld [vmem:[%s456_s7 + $0x30] sm:$0xff] }
   0x9   :  { %249 = vmatmul.msk.f32.vlgmr.msra.gmra.mxu0 %vm44_vm0, %v34_v4  ;;  %173 = vmatpush.msra.mxu1 %v148_v21  ;;  %v146_v23 = vld [vmem:[%s454_s5] sm:$0xff]  ;;  %v190_v43 = vld [vmem:[%s456_s7 + $0x28] sm:$0xff]  ;;  %v188_v48 = vld [vmem:[%s456_s7 + $0x18] sm:$0xff] }
   0xa   :  { %212 = vmatpush.msra.mxu2 %v192_v39  ;;  %255 = vmatpush.msra.mxu3 %v192_v39  ;;  %v189_v45 = vld [vmem:[%s456_s7 + $0x20] sm:$0xff] }
   0xb   :  { %174 = vmatpush.msra.mxu1 %v147_v22 }
   0xc   :  { %213 = vmatpush.msra.mxu2 %v191_v40  ;;  %256 = vmatpush.msra.mxu3 %v191_v40 }
   0xd   :  { %175 = vmatpush.msra.mxu1 %v146_v23  ;;  %v268_v23 = vld [vmem:[%s457_s8] ss:$0 sm:$0xff]  ;;  %s305_s8 = smov 8  }
   0xe   :  { %214 = vmatpush.msra.mxu2 %v190_v43  ;;  %257 = vmatpush.msra.mxu3 %v190_v43 }
  0x10   :  { %215 = vmatpush.msra.mxu2 %v189_v45  ;;  %258 = vmatpush.msra.mxu3 %v189_v45 }
  0x11   :  { %250 = vmatmul.msk.f32.gmra.mxu0 %vm44_vm0, %v35_v5 }
  0x12   :  { %216 = vmatpush.msra.mxu2 %v188_v48  ;;  %259 = vmatpush.msra.mxu3 %v188_v48 }
  0x86   :  { %v68_v7 = vpop.f32.mrf.mxu0 }
  0x87   :  { %v69_v9 = vadd.f32 %v266_v6, %v68_v7 }
  0x89   :  { %v382_v10 = vadd.f32 %v74_v8, %v69_v9 }
  0x8b   :  { %v78_v11 = vmul.f32 %v382_v10, %v382_v10 }
  0x8d   :  { %v80_v12 = vsel %vm44_vm0, %v78_v11, 0.0 }
  0x8e   :  { %v71_v13 = vpop.f32.mrf.mxu0  ;;  %81 = vadd.xlane.f32.xlu0 %v80_v12 }
  0x8f   :  { %v72_v15 = vadd.f32 %v266_v6, %v71_v13 }
  0x91   :  { %v390_v16 = vadd.f32 %v75_v14, %v72_v15  ;;  %v186_v14 = vld [vmem:[%s456_s7 + $0x8] sm:$0xff]  ;;  %v185_v15 = vld [vmem:[%s456_s7] sm:$0xff] }
  0x93   :  { %v79_v17 = vmul.f32 %v390_v16, %v390_v16 }
  0x95   :  { %v83_v18 = vsel %vm44_vm0, %v79_v17, 0.0 }
  0x96   :  { %84 = vadd.xlane.f32.xlu0 %v83_v18 }
 0x101   :  { %v82_v19 = vpop.xlane.xlu0 %81 }
 0x102   :  { %269 = vrsqrt.f32 %v82_v19  ;;  %vm93_vm1 = vcmp.eq.f32.partialorder %v82_v19, inf  ;;  %v96_v35 = vand.u32 2147483648, %v82_v19  ;;  %vm95_vm2 = vcmp.eq.f32.partialorder %v82_v19, 0.0 }
 0x108   :  { %v270_v24 = vpop.eup %269 }
 0x109   :  { %v87_v25 = vmul.f32 %v270_v24, %v82_v19  ;;  %v85_v26 = vpop.xlane.xlu0 %84 }
 0x10a   :  { %271 = vrsqrt.f32 %v85_v26  ;;  %vm105_vm3 = vcmp.eq.f32.partialorder %v85_v26, inf  ;;  %v108_v47 = vand.u32 2147483648, %v85_v26  ;;  %vm107_vm4 = vcmp.eq.f32.partialorder %v85_v26, 0.0 }
 0x10b   :  { %v88_v27 = vmul.f32 %v270_v24, %v87_v25 }
 0x10d   :  { %v89_v28 = vmul.f32 0.5, %v88_v27 }
 0x10f   :  { %v90_v29 = vsub.f32 1.5, %v89_v28 }
 0x110   :  { %v272_v30 = vpop.eup %271 }
 0x111   :  { %v91_v31 = vmul.f32 %v270_v24, %v90_v29  ;;  %v99_v32 = vmul.f32 %v272_v30, %v85_v26 }
 0x113   :  { %v92_v33 = vmul.f32 %v91_v31, %v82_v19  ;;  %v100_v34 = vmul.f32 %v272_v30, %v99_v32 }
 0x115   :  { %v94_v36 = vsel %vm93_vm1, %v82_v19, %v92_v33  ;;  %v101_v37 = vmul.f32 0.5, %v100_v34 }
 0x116   :  { %v97_v38 = vsel %vm95_vm2, %v96_v35, %v94_v36 }
 0x117   :  { %v110_v41 = vmax.f32 %v97_v38, 1e-05  ;;  %v102_v42 = vsub.f32 1.5, %v101_v37 }
 0x119   :  { %273 = vrcp.f32 %v110_v41  ;;  %v103_v44 = vmul.f32 %v272_v30, %v102_v42  ;;  %v125_v55 = vand.u32 2147483648, %v110_v41  ;;  %v123_v57 = vand.u32 2147483647, %v110_v41 }
 0x11a   :  { %vm119_vm6 = vweird.f32 %v110_v41 }
 0x11b   :  { %v104_v46 = vmul.f32 %v103_v44, %v85_v26  ;;  %v126_v61 = vor.u32 1.1754944e-38, %v125_v55  ;;  %vm124_vm8 = vcmp.eq.f32.partialorder %v123_v57, 8.507059e+37 }
 0x11d   :  { %v106_v49 = vsel %vm105_vm3, %v85_v26, %v104_v46 }
 0x11e   :  { %v109_v50 = vsel %vm107_vm4, %v108_v47, %v106_v49 }
 0x11f   :  { %v274_v51 = vpop.eup %273  ;;  %v111_v52 = vmax.f32 %v109_v50, 1e-05 }
 0x120   :  { %v115_v53 = vmul.f32 %v274_v51, %v110_v41  ;;  %vm120_vm5 = vweird.f32 %v274_v51 }
 0x121   :  { %275 = vrcp.f32 %v111_v52  ;;  %vm121_vm7 = vmor %vm119_vm6, %vm120_vm5  ;;  %v140_v3 = vand.u32 2147483648, %v111_v52  ;;  %v138_v6 = vand.u32 2147483647, %v111_v52  ;;  %vm134_vm10 = vweird.f32 %v111_v52 }
 0x122   :  { %v116_v54 = vsub.f32 1.0, %v115_v53 }
 0x123   :  { %v141_v8 = vor.u32 1.1754944e-38, %v140_v3  ;;  %vm139_vm12 = vcmp.eq.f32.partialorder %v138_v6, 8.507059e+37 }
 0x124   :  { %v117_v56 = vmul.f32 %v274_v51, %v116_v54 }
 0x126   :  { %v118_v58 = vadd.f32 %v274_v51, %v117_v56 }
 0x127   :  { %v276_v59 = vpop.eup %275 }
 0x128   :  { %v122_v62 = vsel %vm121_vm7, %v274_v51, %v118_v58  ;;  %v130_v63 = vmul.f32 %v276_v59, %v111_v52  ;;  %vm135_vm9 = vweird.f32 %v276_v59 }
 0x129   :  { %v127_v0 = vsel %vm124_vm8, %v126_v61, %v122_v62  ;;  %vm136_vm11 = vmor %vm134_vm10, %vm135_vm9 }
 0x12a   :  { %v128_v1 = vmul.f32 %v127_v0, %v113_v60  ;;  %v131_v2 = vsub.f32 1.0, %v130_v63 }
 0x12c   :  { %v144_v4 = vmul.f32 %v128_v1, %v382_v10  ;;  %v132_v5 = vmul.f32 %v276_v59, %v131_v2  ;;  %v187_v10 = vld [vmem:[%s456_s7 + $0x10] sm:$0xff]  ;;  %s303_s7 = smov [#allocation3]  }
 0x12d   :  { %217 = vmatpush.msra.mxu2 %v187_v10  ;;  %260 = vmatpush.msra.mxu3 %v187_v10 }
 0x12e   :  { %251 = vmatmul.msk.f32.vlgmr.msra.gmra.mxu1 %vm44_vm0, %v144_v4  ;;  %v133_v7 = vadd.f32 %v276_v59, %v132_v5 }
 0x12f   :  { %218 = vmatpush.msra.mxu2 %v186_v14  ;;  %261 = vmatpush.msra.mxu3 %v186_v14 }
 0x130   :  { %v137_v9 = vsel %vm136_vm11, %v276_v59, %v133_v7 }
 0x131   :  { %v142_v11 = vsel %vm139_vm12, %v141_v8, %v137_v9  ;;  %219 = vmatpush.msra.mxu2 %v185_v15  ;;  %262 = vmatpush.msra.mxu3 %v185_v15 }
 0x132   :  { %v143_v12 = vmul.f32 %v142_v11, %v113_v60 }
 0x134   :  { %v145_v13 = vmul.f32 %v143_v12, %v390_v16  ;;  %v267_v16 = vld [vmem:[%s455_s6] ss:$0 sm:$0xff]  ;;  %s235_s6 = sshll.u32 %s303_s7, 4  ;;  %s236_s6 = int_to_ptr.vmem [resolvable:$true] %s235_s6 }
 0x136   :  { %252 = vmatmul.msk.f32.gmra.mxu1 %vm44_vm0, %v145_v13 }
 0x1ab   :  { %v177_v17 = vpop.f32.mrf.mxu1 }
 0x1ac   :  { %v178_v18 = vadd.f32 %v267_v16, %v177_v17 }
 0x1ae   :  { %v183_v19 = vmax.f32 %v178_v18, 0.0 }
 0x1b0   :  { %253 = vmatmul.msk.f32.vlgmr.msra.gmra.mxu2 %vm197_vm13, %v183_v19 }
 0x1b3   :  { %v180_v20 = vpop.f32.mrf.mxu1 }
 0x1b4   :  { %v181_v21 = vadd.f32 %v267_v16, %v180_v20 }
 0x1b6   :  { %v184_v22 = vmax.f32 %v181_v21, 0.0 }
 0x1b8   :  { %254 = vmatmul.msk.f32.vlgmr.msra.gmra.mxu3 %vm197_vm13, %v184_v22 }
 0x233   :  { %v221_v24 = vpop.f32.mrf.mxu2 }
 0x234   :  { %v222_v25 = vadd.f32 %v268_v23, %v221_v24 }
 0x236   :  { %v227_v26 = vadd.f32 %v222_v25, %v144_v4 }
 0x238   :  { %229 = vst.msk [vmem:[#allocation3] sm:$0xff] %vm44_vm0, %v227_v26 }
 0x23b   :  { %v224_v27 = vpop.f32.mrf.mxu3 }
 0x23c   :  { %v225_v28 = vadd.f32 %v268_v23, %v224_v27 }
 0x23e   :  { %v228_v29 = vadd.f32 %v225_v28, %v145_v13 }
 0x240   :  { %230 = vst.msk [vmem:[#allocation3 + $0x8] sm:$0xff] %vm44_vm0, %v228_v29 }
 0x241   :  { %243 = dma.vmem_to_hbm [thread:$0]  %s236_s6, 256, %s238_s28, [#allocation4], %s304_s29, %s304_s29, %s305_s8  }
 0x242   :  { %301 = dma.done.wait [#allocation4], 256  }
 0x243   :  { %302 = vsyncadd [#allocation4], 4294967040 }
 0x244   :  { %248 = vsyncpa [#allocation4], 1 }

// kernel: transformer_encoder_layer.4
= control target key start
LH: loop header
LB: loop body
LE: loop exit
PB: predicated region body
PF: predicated region fallthrough
CT: control target
= control target key end

     0   :  { %vm41_vm0 = vcmask 64512   ;;  %s852_s0 = inlined_call_operand.vmem [shape: f32[8,8,8], index: 0, kind: input, shape index: {}]   ;;  %s853_s1 = inlined_call_operand.vmem [shape: f32[8,8,8], index: 1, kind: input, shape index: {}]   ;;  %s854_s2 = inlined_call_operand.vmem [shape: f32[8,8,8], index: 2, kind: input, shape index: {}]   ;;  %s855_s3 = inlined_call_operand.vmem [shape: f32[8,8,8], index: 3, kind: output, shape index: {0}]   ;;  %s856_s4 = inlined_call_operand.hbm [shape: f32[8,8,8], index: 4, kind: output, shape index: {1}]  }
   0x1   :  { %v25_v0 = vld [vmem:[%s853_s1] sm:$0xff]  ;;  %v27_v1 = vld [vmem:[%s853_s1 + $0x10] sm:$0xff]  ;;  %v26_v5 = vld [vmem:[%s853_s1 + $0x8] sm:$0xff] }
   0x2   :  { %v17_v2 = vld [vmem:[%s852_s0] sm:$0xff]  ;;  %568 = vmatpush.xpose.msk.msra.mxu0 %vm41_vm0, %v25_v0  ;;  %572 = vmatpush.xpose.msk.msra.mxu2 %vm41_vm0, %v27_v1  ;;  %v19_v3 = vld [vmem:[%s852_s0 + $0x10] sm:$0xff]  ;;  %v28_v6 = vld [vmem:[%s853_s1 + $0x18] sm:$0xff] }
   0x3   :  { %v31_v4 = vld [vmem:[%s853_s1 + $0x30] sm:$0xff]  ;;  %570 = vmatpush.xpose.msk.msra.mxu1 %vm41_vm0, %v26_v5  ;;  %v18_v7 = vld [vmem:[%s852_s0 + $0x8] sm:$0xff]  ;;  %574 = vmatpush.xpose.msk.msra.mxu3 %vm41_vm0, %v28_v6  ;;  %v20_v8 = vld [vmem:[%s852_s0 + $0x18] sm:$0xff] }
   0x4   :  { %v32_v9 = vld [vmem:[%s853_s1 + $0x38] sm:$0xff]  ;;  %v30_v10 = vld [vmem:[%s853_s1 + $0x28] sm:$0xff]  ;;  %v29_v11 = vld [vmem:[%s853_s1 + $0x20] sm:$0xff] }
   0x5   :  { %569 = vmatmul.msk.f32.vlgmr.msra.gmra.mxu0 %vm41_vm0, %v17_v2  ;;  %573 = vmatmul.msk.f32.vlgmr.msra.gmra.mxu2 %vm41_vm0, %v19_v3 }
   0x6   :  { %580 = vmatpush.xpose.msk.msrb.mxu2 %vm41_vm0, %v31_v4  ;;  %571 = vmatmul.msk.f32.vlgmr.msra.gmra.mxu1 %vm41_vm0, %v18_v7 }
   0x7   :  { %582 = vmatpush.xpose.msk.msrb.mxu3 %vm41_vm0, %v32_v9 }
   0x8   :  { %10 = vsyncpa [#allocation3], 0  ;;  %575 = vmatmul.msk.f32.vlgmr.msra.gmra.mxu3 %vm41_vm0, %v20_v8  ;;  %578 = vmatpush.xpose.msk.msrb.mxu1 %vm41_vm0, %v30_v10  ;;  %v23_v12 = vld [vmem:[%s852_s0 + $0x30] sm:$0xff]  ;;  %v21_v13 = vld [vmem:[%s852_s0 + $0x20] sm:$0xff]  ;;  %s554_s12 = sshll.u32 %s856_s4, 4  ;;  %s654_s13 = smov 128   ;;  %s555_s12 = int_to_ptr.hbm [resolvable:$true] %s554_s12 }
   0x9   :  { %576 = vmatpush.xpose.msk.msrb.mxu0 %vm41_vm0, %v29_v11  ;;  %v22_v14 = vld [vmem:[%s852_s0 + $0x28] sm:$0xff]  ;;  %v24_v15 = vld [vmem:[%s852_s0 + $0x38] sm:$0xff]  ;;  %s655_s14 = smov 8  }
   0xd   :  { %581 = vmatmul.msk.f32.vlgmr.msrb.gmra.mxu2 %vm41_vm0, %v23_v12  ;;  %577 = vmatmul.msk.f32.vlgmr.msrb.gmra.mxu0 %vm41_vm0, %v21_v13 }
   0xe   :  { %579 = vmatmul.msk.f32.vlgmr.msrb.gmra.mxu1 %vm41_vm0, %v22_v14 }
  0x10   :  { %583 = vmatmul.msk.f32.vlgmr.msrb.gmra.mxu3 %vm41_vm0, %v24_v15 }
  0x82   :  { %v65_v16 = vpop.f32.mrf.mxu0 }
  0x83   :  { %v250_v17 = vmul.f32 0.35355338, %v65_v16  ;;  %v91_v18 = vpop.f32.mrf.mxu1  ;;  %v33_v16 = vld [vmem:[%s854_s2] sm:$0xff] }
  0x84   :  { %v251_v20 = vmul.f32 0.35355338, %v91_v18  ;;  %372 = vmatpush.msra.mxu0 %v33_v16  ;;  %v36_v18 = vld [vmem:[%s854_s2 + $0x18] sm:$0xff] }
  0x85   :  { %v258_v19 = vsel %vm41_vm0, %v250_v17, -inf  ;;  %441 = vmatpush.msra.mxu3 %v36_v18 }
  0x86   :  { %259 = vmax.xlane.f32.xlu1 %v258_v19  ;;  %v261_v25 = vsel %vm41_vm0, %v251_v20, -inf  ;;  %v34_v19 = vld [vmem:[%s854_s2 + $0x8] sm:$0xff] }
  0x87   :  { %395 = vmatpush.msra.mxu1 %v34_v19 }
  0x88   :  { %v117_v21 = vpop.f32.mrf.mxu2 }
  0x89   :  { %v252_v22 = vmul.f32 0.35355338, %v117_v21  ;;  %v39_v21 = vld [vmem:[%s854_s2 + $0x30] sm:$0xff] }
  0x8a   :  { %v169_v32 = vpop.f32.mrf.mxu0 }
  0x8b   :  { %v143_v23 = vpop.f32.mrf.mxu3  ;;  %v264_v24 = vsel %vm41_vm0, %v252_v22, -inf  ;;  %v195_v26 = vpop.f32.mrf.mxu1  ;;  %v254_v36 = vmul.f32 0.35355338, %v169_v32 }
  0x8c   :  { %265 = vmax.xlane.f32.xlu0 %v264_v24  ;;  %v253_v27 = vmul.f32 0.35355338, %v143_v23  ;;  %v255_v28 = vmul.f32 0.35355338, %v195_v26  ;;  %v37_v23 = vld [vmem:[%s854_s2 + $0x20] sm:$0xff] }
  0x8d   :  { %v270_v39 = vsel %vm41_vm0, %v254_v36, -inf  ;;  %464 = vmatpush.msrb.mxu0 %v37_v23 }
  0x8e   :  { %262 = vmax.xlane.f32.xlu1 %v261_v25  ;;  %v267_v31 = vsel %vm41_vm0, %v253_v27, -inf  ;;  %v273_v35 = vsel %vm41_vm0, %v255_v28, -inf }
  0x90   :  { %v221_v29 = vpop.f32.mrf.mxu2 }
  0x91   :  { %v256_v30 = vmul.f32 0.35355338, %v221_v29 }
  0x93   :  { %v247_v33 = vpop.f32.mrf.mxu3  ;;  %v276_v34 = vsel %vm41_vm0, %v256_v30, -inf }
  0x94   :  { %268 = vmax.xlane.f32.xlu0 %v267_v31  ;;  %277 = vmax.xlane.f32.xlu2 %v276_v34  ;;  %v257_v37 = vmul.f32 0.35355338, %v247_v33 }
  0x96   :  { %274 = vmax.xlane.f32.xlu1 %v273_v35  ;;  %v279_v38 = vsel %vm41_vm0, %v257_v37, -inf }
  0x9c   :  { %280 = vmax.xlane.f32.xlu2 %v279_v38  ;;  %271 = vmax.xlane.f32.xlu0 %v270_v39 }
  0xf9   :  { %v260_v40 = vpop.xlane.xlu1 %259 }
  0xfa   :  { %v282_v41 = vsub.f32 %v250_v17, %v260_v40  ;;  %v35_v17 = vld [vmem:[%s854_s2 + $0x10] sm:$0xff] }
  0xfb   :  { %418 = vmatpush.msra.mxu2 %v35_v17 }
  0xfc   :  { %v290_v42 = vmul.f32 1.442695, %v282_v41 }
  0xfd   :  { %510 = vmatpush.msrb.mxu2 %v39_v21 }
  0xfe   :  { %595 = vpow2.f32 %v290_v42 }
  0xff   :  { %v266_v43 = vpop.xlane.xlu0 %265 }
 0x100   :  { %v284_v44 = vsub.f32 %v252_v22, %v266_v43  ;;  %v40_v22 = vld [vmem:[%s854_s2 + $0x38] sm:$0xff] }
 0x101   :  { %v263_v45 = vpop.xlane.xlu1 %262  ;;  %533 = vmatpush.msrb.mxu3 %v40_v22 }
 0x102   :  { %v294_v46 = vmul.f32 1.442695, %v284_v44  ;;  %v283_v47 = vsub.f32 %v251_v20, %v263_v45 }
 0x104   :  { %v753_v48 = vpop.eup %595  ;;  %597 = vpow2.f32 %v294_v46  ;;  %v292_v50 = vmul.f32 1.442695, %v283_v47 }
 0x105   :  { %v306_v49 = vsel %vm41_vm0, %v753_v48, 0.0 }
 0x106   :  { %307 = vadd.xlane.f32.xlu1 %v306_v49  ;;  %599 = vpow2.f32 %v292_v50 }
 0x107   :  { %v269_v51 = vpop.xlane.xlu0 %268  ;;  %v278_v52 = vpop.xlane.xlu2 %277 }
 0x108   :  { %v285_v53 = vsub.f32 %v253_v27, %v269_v51  ;;  %v288_v56 = vsub.f32 %v256_v30, %v278_v52  ;;  %v38_v27 = vld [vmem:[%s854_s2 + $0x28] sm:$0xff]  ;;  %s653_s2 = smov [#allocation2]  }
 0x109   :  { %v275_v59 = vpop.xlane.xlu1 %274  ;;  %487 = vmatpush.msrb.mxu1 %v38_v27  ;;  %s552_s9 = sshll.u32 %s653_s2, 4  ;;  %s553_s9 = int_to_ptr.vmem [resolvable:$true] %s552_s9 }
 0x10a   :  { %v757_v54 = vpop.eup %597  ;;  %v296_v55 = vmul.f32 1.442695, %v285_v53  ;;  %v302_v58 = vmul.f32 1.442695, %v288_v56  ;;  %v287_v2 = vsub.f32 %v255_v28, %v275_v59 }
 0x10b   :  { %v312_v57 = vsel %vm41_vm0, %v757_v54, 0.0 }
 0x10c   :  { %601 = vpow2.f32 %v296_v55  ;;  %313 = vadd.xlane.f32.xlu2 %v312_v57  ;;  %v600_v62 = vpop.eup %599  ;;  %v300_v7 = vmul.f32 1.442695, %v287_v2 }
 0x10d   :  { %603 = vpow2.f32 %v302_v58  ;;  %v309_v5 = vsel %vm41_vm0, %v600_v62, 0.0 }
 0x10f   :  { %v281_v60 = vpop.xlane.xlu2 %280  ;;  %v272_v61 = vpop.xlane.xlu0 %271 }
 0x110   :  { %v289_v63 = vsub.f32 %v257_v37, %v281_v60  ;;  %v286_v0 = vsub.f32 %v254_v36, %v272_v61 }
 0x112   :  { %v602_v1 = vpop.eup %601  ;;  %v304_v3 = vmul.f32 1.442695, %v289_v63  ;;  %v298_v4 = vmul.f32 1.442695, %v286_v0 }
 0x113   :  { %v315_v6 = vsel %vm41_vm0, %v602_v1, 0.0  ;;  %v763_v8 = vpop.eup %603 }
 0x114   :  { %605 = vpow2.f32 %v304_v3  ;;  %310 = vadd.xlane.f32.xlu2 %v309_v5  ;;  %316 = vadd.xlane.f32.xlu0 %v315_v6  ;;  %v324_v12 = vsel %vm41_vm0, %v763_v8, 0.0 }
 0x115   :  { %607 = vpow2.f32 %v298_v4 }
 0x116   :  { %609 = vpow2.f32 %v300_v7 }
 0x11a   :  { %v606_v9 = vpop.eup %605 }
 0x11b   :  { %v608_v10 = vpop.eup %607  ;;  %v327_v11 = vsel %vm41_vm0, %v606_v9, 0.0 }
 0x11c   :  { %328 = vadd.xlane.f32.xlu1 %v327_v11  ;;  %325 = vadd.xlane.f32.xlu0 %v324_v12  ;;  %v318_v13 = vsel %vm41_vm0, %v608_v10, 0.0  ;;  %v769_v14 = vpop.eup %609 }
 0x11d   :  { %319 = vadd.xlane.f32.xlu2 %v318_v13  ;;  %v321_v15 = vsel %vm41_vm0, %v769_v14, 0.0 }
 0x124   :  { %322 = vadd.xlane.f32.xlu0 %v321_v15 }
 0x179   :  { %v308_v20 = vpop.xlane.xlu1 %307 }
 0x17a   :  { %611 = vrcp.f32 %v308_v20 }
 0x17f   :  { %v314_v24 = vpop.xlane.xlu2 %313 }
 0x180   :  { %v612_v25 = vpop.eup %611  ;;  %613 = vrcp.f32 %v314_v24 }
 0x181   :  { %v338_v26 = vmul.f32 %v612_v25, %v753_v48 }
 0x183   :  { %346 = vst.msk [vmem:[#allocation2] sm:$0xff] %vm41_vm0, %v338_v26  ;;  %584 = vmatmul.msk.f32.vlgmr.msra.gmra.mxu0 %vm41_vm0, %v338_v26 }
 0x186   :  { %v614_v28 = vpop.eup %613 }
 0x187   :  { %v340_v29 = vmul.f32 %v614_v28, %v757_v54  ;;  %v311_v30 = vpop.xlane.xlu2 %310  ;;  %v317_v31 = vpop.xlane.xlu0 %316 }
 0x188   :  { %615 = vrcp.f32 %v311_v30 }
 0x189   :  { %348 = vst.msk [vmem:[#allocation2 + $0x10] sm:$0xff] %vm41_vm0, %v340_v29  ;;  %617 = vrcp.f32 %v317_v31  ;;  %586 = vmatmul.msk.f32.vlgmr.msra.gmra.mxu2 %vm41_vm0, %v340_v29 }
 0x18e   :  { %v616_v32 = vpop.eup %615 }
 0x18f   :  { %v618_v33 = vpop.eup %617  ;;  %v339_v34 = vmul.f32 %v616_v32, %v600_v62  ;;  %v329_v35 = vpop.xlane.xlu1 %328 }
 0x190   :  { %v326_v36 = vpop.xlane.xlu0 %325  ;;  %v341_v37 = vmul.f32 %v618_v33, %v602_v1  ;;  %619 = vrcp.f32 %v329_v35  ;;  %v320_v38 = vpop.xlane.xlu2 %319 }
 0x191   :  { %347 = vst.msk [vmem:[#allocation2 + $0x8] sm:$0xff] %vm41_vm0, %v339_v34  ;;  %621 = vrcp.f32 %v320_v38  ;;  %585 = vmatmul.msk.f32.vlgmr.msra.gmra.mxu1 %vm41_vm0, %v339_v34 }
 0x192   :  { %349 = vst.msk [vmem:[#allocation2 + $0x18] sm:$0xff] %vm41_vm0, %v341_v37  ;;  %623 = vrcp.f32 %v326_v36  ;;  %587 = vmatmul.msk.f32.vlgmr.msra.gmra.mxu3 %vm41_vm0, %v341_v37 }
 0x196   :  { %v620_v39 = vpop.eup %619 }
 0x197   :  { %v622_v40 = vpop.eup %621  ;;  %v345_v41 = vmul.f32 %v620_v39, %v606_v9 }
 0x198   :  { %v323_v42 = vpop.xlane.xlu0 %322  ;;  %v624_v43 = vpop.eup %623  ;;  %v342_v44 = vmul.f32 %v622_v40, %v608_v10 }
 0x199   :  { %625 = vrcp.f32 %v323_v42  ;;  %353 = vst.msk [vmem:[#allocation2 + $0x38] sm:$0xff] %vm41_vm0, %v345_v41  ;;  %v344_v45 = vmul.f32 %v624_v43, %v763_v8 }
 0x19a   :  { %350 = vst.msk [vmem:[#allocation2 + $0x20] sm:$0xff] %vm41_vm0, %v342_v44  ;;  %588 = vmatmul.msk.f32.vlgmr.msrb.gmra.mxu0 %vm41_vm0, %v342_v44  ;;  %591 = vmatmul.msk.f32.vlgmr.msrb.gmra.mxu3 %vm41_vm0, %v345_v41 }
 0x19b   :  { %352 = vst.msk [vmem:[#allocation2 + $0x30] sm:$0xff] %vm41_vm0, %v344_v45  ;;  %590 = vmatmul.msk.f32.vlgmr.msrb.gmra.mxu2 %vm41_vm0, %v344_v45 }
 0x19f   :  { %v626_v46 = vpop.eup %625 }
 0x1a0   :  { %v343_v47 = vmul.f32 %v626_v46, %v769_v14 }
 0x1a2   :  { %351 = vst.msk [vmem:[#allocation2 + $0x28] sm:$0xff] %vm41_vm0, %v343_v47  ;;  %589 = vmatmul.msk.f32.vlgmr.msrb.gmra.mxu1 %vm41_vm0, %v343_v47 }
 0x1a3   :  { %560 = dma.vmem_to_hbm [thread:$0]  %s553_s9, 1024, %s555_s12, [#allocation3], %s654_s13, %s654_s13, %s655_s14  }
 0x200   :  { %v374_v48 = vpop.f32.mrf.mxu0 }
 0x201   :  { %538 = vst.msk [vmem:[%s855_s3] sm:$0xff] %vm41_vm0, %v374_v48 }
 0x20c   :  { %v420_v49 = vpop.f32.mrf.mxu2 }
 0x20d   :  { %540 = vst.msk [vmem:[%s855_s3 + $0x10] sm:$0xff] %vm41_vm0, %v420_v49 }
 0x20e   :  { %v397_v50 = vpop.f32.mrf.mxu1 }
 0x20f   :  { %539 = vst.msk [vmem:[%s855_s3 + $0x8] sm:$0xff] %vm41_vm0, %v397_v50 }
 0x215   :  { %v443_v51 = vpop.f32.mrf.mxu3 }
 0x216   :  { %541 = vst.msk [vmem:[%s855_s3 + $0x18] sm:$0xff] %vm41_vm0, %v443_v51 }
 0x217   :  { %v466_v52 = vpop.f32.mrf.mxu0 }
 0x218   :  { %542 = vst.msk [vmem:[%s855_s3 + $0x20] sm:$0xff] %vm41_vm0, %v466_v52 }
 0x21d   :  { %v535_v53 = vpop.f32.mrf.mxu3 }
 0x21e   :  { %v512_v54 = vpop.f32.mrf.mxu2  ;;  %545 = vst.msk [vmem:[%s855_s3 + $0x38] sm:$0xff] %vm41_vm0, %v535_v53 }
 0x21f   :  { %v489_v55 = vpop.f32.mrf.mxu1  ;;  %544 = vst.msk [vmem:[%s855_s3 + $0x30] sm:$0xff] %vm41_vm0, %v512_v54 }
 0x220   :  { %543 = vst.msk [vmem:[%s855_s3 + $0x28] sm:$0xff] %vm41_vm0, %v489_v55 }
 0x221   :  { %651 = dma.done.wait [#allocation3], 1024  }
 0x222   :  { %652 = vsyncadd [#allocation3], 4294966272 }
 0x223   :  { %567 = vsyncpa [#allocation3], 1 }

</bundles_post_ra>
